<compile_context>
chip_gen: v6e
topology: v6e:2x2x1
jax: 0.10.0
libtpu: 0.0.40
codegen_flags: <defaults>
</compile_context>

<pallas_src>
import functools

import jax
import jax.numpy as jnp
from jax.experimental import pallas as pl
from jax.experimental.pallas import tpu as pltpu


LANE = 128  # pad every feature dim to one full lane width


def _decoder_kernel(z_ref, w_ref, p_ref, o_ref, xpad_ref, *, layer_flags,
                    eps=1e-5):
    """Fused decoder forward.

    z_ref:    (B, latent_dim)  unpadded input activations
    w_ref:    (L, LANE, LANE)  per-layer weights, pre-transposed to (F_in, F_out),
                               zero-padded
    p_ref:    (L, 2, LANE)     BN layers: [gamma; beta]; plain layers: [bias; 0]
    o_ref:    (B, LANE)        padded output activations (lane-dense store)
    xpad_ref: (B, LANE)        VMEM scratch used to zero-extend z in-kernel
    layer_flags: static tuple of (do_bn, do_relu, do_res) per layer
    """
    bsz, latent = z_ref.shape
    inv_b = 1.0 / bsz

    # In-kernel zero-pad of the input (replaces the wrapper-side XLA pad op).
    xpad_ref[...] = jnp.zeros_like(xpad_ref)
    xpad_ref[:, :latent] = z_ref[...]
    x = xpad_ref[...]                                   # (B, LANE) f32

    for l, (do_bn, do_relu, do_res) in enumerate(layer_flags):
        # Linear: one MXU matmul (weights already transposed & resident).
        y = jnp.dot(x, w_ref[l], preferred_element_type=jnp.float32)
        prm = p_ref[l]                                  # (2, LANE)
        if do_bn:
            # Training-mode BN.  Linear bias is skipped: it is exactly
            # cancelled by the batch-mean subtraction.
            # Two independent reductions -> overlap in the XLU pipeline.
            s1 = jnp.sum(y, axis=0, keepdims=True)      # (1, LANE)
            s2 = jnp.sum(y * y, axis=0, keepdims=True)  # (1, LANE)
            mean = s1 * inv_b
            var = s2 * inv_b - mean * mean
            gamma = prm[0:1, :]
            beta = prm[1:2, :]
            # Fold the whole BN into one scale/shift on (1, LANE) data; the
            # (B, LANE) activation only sees a single fused mul+add.
            scale = gamma * jax.lax.rsqrt(var + eps)    # (1, LANE)
            shift = beta - mean * scale                 # (1, LANE)
            y = y * scale + shift
        else:
            # Plain linear (fc_out): bias only.  (Stride-0 sublane-broadcast
            # load skipped: single tiny op, not worth the lowering risk.)
            y = y + prm[0:1, :]
        if do_relu:
            y = jnp.maximum(y, 0.0)
        if do_res:
            # residual is the pre-Linear layer input, added after ReLU.
            y = y + x
        x = y
    o_ref[...] = x.astype(o_ref.dtype)


def make_decoder_fn(layer_flags, output_dim):
    """Builds a jitted forward so the pallas_call and the cheap output slice
    share one dispatch / XLA executable."""
    kernel = functools.partial(_decoder_kernel, layer_flags=layer_flags)

    @jax.jit
    def fwd(z, w_stack, p_stack):
        bsz = z.shape[0]
        out = pl.pallas_call(
            kernel,
            out_shape=jax.ShapeDtypeStruct((bsz, LANE), jnp.float32),
            in_specs=[
                pl.BlockSpec(memory_space=pltpu.MemorySpace.VMEM),
                pl.BlockSpec(memory_space=pltpu.MemorySpace.VMEM),
                pl.BlockSpec(memory_space=pltpu.MemorySpace.VMEM),
            ],
            out_specs=pl.BlockSpec(memory_space=pltpu.MemorySpace.VMEM),
            scratch_shapes=[pltpu.VMEM((bsz, LANE), jnp.float32)],
        )(z, w_stack, p_stack)
        # Lane-dense store inside the kernel; this slice is fused in the same
        # jit region (no extra dispatch).
        return out[:, :output_dim]

    return fwd


def init_params(key, latent_dim, output_dim, hidden_dims):
    """Deterministic synthetic parameters mimicking the PyTorch module shapes."""
    params = []
    in_dim = latent_dim
    for h_dim in hidden_dims:
        key, kw, kb = jax.random.split(key, 3)
        bound = 1.0 / jnp.sqrt(in_dim)
        w = jax.random.uniform(kw, (h_dim, in_dim), jnp.float32, -bound, bound)
        b = jax.random.uniform(kb, (h_dim,), jnp.float32, -bound, bound)
        params.append(dict(w=w, b=b,
                           gamma=jnp.ones((h_dim,), jnp.float32),
                           beta=jnp.zeros((h_dim,), jnp.float32),
                           in_dim=in_dim, out_dim=h_dim))
        in_dim = h_dim
    key, kw, kb = jax.random.split(key, 3)
    bound = 1.0 / jnp.sqrt(in_dim)
    w_out = jax.random.uniform(kw, (output_dim, in_dim), jnp.float32, -bound, bound)
    b_out = jax.random.uniform(kb, (output_dim,), jnp.float32, -bound, bound)
    return params, (w_out, b_out)


def pack_params(params, out_params, output_dim):
    """One-time packing: pre-transpose, zero-pad to LANE, stack all layers."""
    w_list, p_list, flags = [], [], []
    for p in params:
        assert p["in_dim"] <= LANE and p["out_dim"] <= LANE
        wt = jnp.zeros((LANE, LANE), jnp.float32)
        wt = wt.at[:p["in_dim"], :p["out_dim"]].set(p["w"].T)
        do_bn = p["out_dim"] > 1            # BatchNorm1d vs Identity (as in spec)
        prm = jnp.zeros((2, LANE), jnp.float32)
        if do_bn:
            # Bias is dropped (cancelled by BN mean subtraction).
            prm = prm.at[0, :p["out_dim"]].set(p["gamma"])
            prm = prm.at[1, :p["out_dim"]].set(p["beta"])
        else:
            prm = prm.at[0, :p["out_dim"]].set(p["b"])
        w_list.append(wt)
        p_list.append(prm)
        flags.append((do_bn,
                      True,                             # ReLU
                      p["in_dim"] == p["out_dim"]))     # residual add
    w_out, b_out = out_params
    in_dim = w_out.shape[1]
    assert in_dim <= LANE and output_dim <= LANE
    wt = jnp.zeros((LANE, LANE), jnp.float32).at[:in_dim, :output_dim].set(w_out.T)
    prm = jnp.zeros((2, LANE), jnp.float32).at[0, :output_dim].set(b_out)
    w_list.append(wt)
    p_list.append(prm)
    flags.append((False, False, False))                 # fc_out: plain linear
    return jnp.stack(w_list), jnp.stack(p_list), tuple(flags)


def reference_forward(z, params, out_params):
    """Plain-JAX reference of the PyTorch forward (training-mode BatchNorm1d)."""
    x = z
    for p in params:
        y = x @ p["w"].T + p["b"]
        if p["out_dim"] > 1:
            mean = jnp.mean(y, axis=0, keepdims=True)
            var = jnp.mean((y - mean) ** 2, axis=0, keepdims=True)
            y = (y - mean) / jnp.sqrt(var + 1e-5) * p["gamma"] + p["beta"]
        y = jnp.maximum(y, 0.0)
        if p["in_dim"] == p["out_dim"]:
            y = y + x
        x = y
    w_out, b_out = out_params
    return x @ w_out.T + b_out


if __name__ == "__main__":
    batch = 8
    latent_dim = 32
    hidden_dims = [32, 32, 64]   # first two blocks take the residual path
    output_dim = 16

    key = jax.random.PRNGKey(0)
    key, kz = jax.random.split(key)
    z = jax.random.normal(kz, (batch, latent_dim), jnp.float32)

    params, out_params = init_params(key, latent_dim, output_dim, hidden_dims)
    w_stack, p_stack, layer_flags = pack_params(params, out_params, output_dim)

    decoder_fn = make_decoder_fn(layer_flags, output_dim)
    logits = decoder_fn(z, w_stack, p_stack)
    logits = jax.block_until_ready(logits)

    ref = reference_forward(z, params, out_params)
    assert logits.shape == (batch, output_dim)
    assert jnp.allclose(logits, ref, atol=1e-4, rtol=1e-4), (
        float(jnp.max(jnp.abs(logits - ref))))

    print("KERNEL_OK")
</pallas_src>

<mosaic_0001>
module attributes {stable_mosaic.version = 11 : i64} {
  func.func @_decoder_kernel(%arg0: memref<8x32xf32, #tpu.memory_space<vmem>>, %arg1: memref<4x128x128xf32, #tpu.memory_space<vmem>>, %arg2: memref<4x2x128xf32, #tpu.memory_space<vmem>>, %arg3: memref<8x128xf32, #tpu.memory_space<vmem>>, %arg4: memref<8x128xf32, #tpu.memory_space<vmem>>) attributes {dimension_semantics = [], scalar_prefetch = 0 : i64, scratch_operands = 1 : i64, tpu.core_type = #tpu.core_type<tc>} {
    %cst = arith.constant 0.000000e+00 : f32
    %0 = vector.broadcast %cst : f32 to vector<8x128xf32>
    %c0 = arith.constant 0 : index
    %c0_0 = arith.constant 0 : index
    %1 = vector.load %arg4[%c0, %c0_0] : memref<8x128xf32, #tpu.memory_space<vmem>>, vector<8x128xf32>
    tpu.vector_store %arg4[%c0, %c0_0], %0 {strides = array<i32>} : memref<8x128xf32, #tpu.memory_space<vmem>>, vector<8x128xf32>,
    %c0_1 = arith.constant 0 : index
    %c0_2 = arith.constant 0 : index
    %2 = vector.load %arg0[%c0_1, %c0_2] : memref<8x32xf32, #tpu.memory_space<vmem>>, vector<8x32xf32>
    %c0_3 = arith.constant 0 : index
    %c0_4 = arith.constant 0 : index
    %3 = vector.load %arg4[%c0_3, %c0_4] : memref<8x128xf32, #tpu.memory_space<vmem>>, vector<8x32xf32>
    tpu.vector_store %arg4[%c0_3, %c0_4], %2 {strides = array<i32>} : memref<8x128xf32, #tpu.memory_space<vmem>>, vector<8x32xf32>,
    %c0_5 = arith.constant 0 : index
    %c0_6 = arith.constant 0 : index
    %4 = vector.load %arg4[%c0_5, %c0_6] : memref<8x128xf32, #tpu.memory_space<vmem>>, vector<8x128xf32>
    %c0_7 = arith.constant 0 : index
    %c0_8 = arith.constant 0 : index
    %c0_9 = arith.constant 0 : index
    %5 = vector.load %arg1[%c0_7, %c0_8, %c0_9] : memref<4x128x128xf32, #tpu.memory_space<vmem>>, vector<1x128x128xf32>
    %6 = vector.shape_cast %5 : vector<1x128x128xf32> to vector<128x128xf32>
    %cst_10 = arith.constant dense<0.000000e+00> : vector<8x128xf32>
    %7 = tpu.matmul %4, %6, %cst_10 {dimension_numbers = #tpu.dot_dimension_numbers<[1], [0], [0], [1], [0, 0, 1, 1], [], []>} : vector<8x128xf32>, vector<128x128xf32>, vector<8x128xf32> -> vector<8x128xf32>
    %c0_11 = arith.constant 0 : index
    %c0_12 = arith.constant 0 : index
    %c0_13 = arith.constant 0 : index
    %8 = vector.load %arg2[%c0_11, %c0_12, %c0_13] : memref<4x2x128xf32, #tpu.memory_space<vmem>>, vector<1x2x128xf32>
    %9 = vector.shape_cast %8 : vector<1x2x128xf32> to vector<2x128xf32>
    %cst_14 = arith.constant dense<0.000000e+00> : vector<128xf32>
    %10 = vector.multi_reduction <add>, %7, %cst_14 [0] : vector<8x128xf32> to vector<128xf32>
    %11 = vector.shape_cast %10 : vector<128xf32> to vector<1x128xf32>
    %12 = arith.mulf %7, %7 : vector<8x128xf32>
    %cst_15 = arith.constant dense<0.000000e+00> : vector<128xf32>
    %13 = vector.multi_reduction <add>, %12, %cst_15 [0] : vector<8x128xf32> to vector<128xf32>
    %14 = vector.shape_cast %13 : vector<128xf32> to vector<1x128xf32>
    %cst_16 = arith.constant 1.250000e-01 : f32
    %15 = vector.broadcast %cst_16 : f32 to vector<1x128xf32>
    %16 = arith.mulf %11, %15 : vector<1x128xf32>
    %cst_17 = arith.constant 1.250000e-01 : f32
    %17 = vector.broadcast %cst_17 : f32 to vector<1x128xf32>
    %18 = arith.mulf %14, %17 : vector<1x128xf32>
    %19 = arith.mulf %16, %16 : vector<1x128xf32>
    %20 = arith.subf %18, %19 : vector<1x128xf32>
    %21 = vector.extract_strided_slice %9 {offsets = [0, 0], sizes = [1, 128], strides = [1, 1]} : vector<2x128xf32> to vector<1x128xf32>
    %22 = vector.extract_strided_slice %9 {offsets = [1, 0], sizes = [1, 128], strides = [1, 1]} : vector<2x128xf32> to vector<1x128xf32>
    %cst_18 = arith.constant 9.99999974E-6 : f32
    %23 = vector.broadcast %cst_18 : f32 to vector<1x128xf32>
    %24 = arith.addf %20, %23 : vector<1x128xf32>
    %25 = math.rsqrt %24 : vector<1x128xf32>
    %26 = arith.mulf %21, %25 : vector<1x128xf32>
    %27 = arith.mulf %16, %26 : vector<1x128xf32>
    %28 = arith.subf %22, %27 : vector<1x128xf32>
    %29 = vector.broadcast %26 : vector<1x128xf32> to vector<8x128xf32>
    %30 = arith.mulf %7, %29 : vector<8x128xf32>
    %31 = vector.broadcast %28 : vector<1x128xf32> to vector<8x128xf32>
    %32 = arith.addf %30, %31 : vector<8x128xf32>
    %cst_19 = arith.constant 0.000000e+00 : f32
    %33 = vector.broadcast %cst_19 : f32 to vector<8x128xf32>
    %34 = arith.maximumf %32, %33 : vector<8x128xf32>
    %35 = arith.addf %34, %4 : vector<8x128xf32>
    %c1 = arith.constant 1 : index
    %c0_20 = arith.constant 0 : index
    %c0_21 = arith.constant 0 : index
    %36 = vector.load %arg1[%c1, %c0_20, %c0_21] : memref<4x128x128xf32, #tpu.memory_space<vmem>>, vector<1x128x128xf32>
    %37 = vector.shape_cast %36 : vector<1x128x128xf32> to vector<128x128xf32>
    %cst_22 = arith.constant dense<0.000000e+00> : vector<8x128xf32>
    %38 = tpu.matmul %35, %37, %cst_22 {dimension_numbers = #tpu.dot_dimension_numbers<[1], [0], [0], [1], [0, 0, 1, 1], [], []>} : vector<8x128xf32>, vector<128x128xf32>, vector<8x128xf32> -> vector<8x128xf32>
    %c1_23 = arith.constant 1 : index
    %c0_24 = arith.constant 0 : index
    %c0_25 = arith.constant 0 : index
    %39 = vector.load %arg2[%c1_23, %c0_24, %c0_25] : memref<4x2x128xf32, #tpu.memory_space<vmem>>, vector<1x2x128xf32>
    %40 = vector.shape_cast %39 : vector<1x2x128xf32> to vector<2x128xf32>
    %cst_26 = arith.constant dense<0.000000e+00> : vector<128xf32>
    %41 = vector.multi_reduction <add>, %38, %cst_26 [0] : vector<8x128xf32> to vector<128xf32>
    %42 = vector.shape_cast %41 : vector<128xf32> to vector<1x128xf32>
    %43 = arith.mulf %38, %38 : vector<8x128xf32>
    %cst_27 = arith.constant dense<0.000000e+00> : vector<128xf32>
    %44 = vector.multi_reduction <add>, %43, %cst_27 [0] : vector<8x128xf32> to vector<128xf32>
    %45 = vector.shape_cast %44 : vector<128xf32> to vector<1x128xf32>
    %cst_28 = arith.constant 1.250000e-01 : f32
    %46 = vector.broadcast %cst_28 : f32 to vector<1x128xf32>
    %47 = arith.mulf %42, %46 : vector<1x128xf32>
    %cst_29 = arith.constant 1.250000e-01 : f32
    %48 = vector.broadcast %cst_29 : f32 to vector<1x128xf32>
    %49 = arith.mulf %45, %48 : vector<1x128xf32>
    %50 = arith.mulf %47, %47 : vector<1x128xf32>
    %51 = arith.subf %49, %50 : vector<1x128xf32>
    %52 = vector.extract_strided_slice %40 {offsets = [0, 0], sizes = [1, 128], strides = [1, 1]} : vector<2x128xf32> to vector<1x128xf32>
    %53 = vector.extract_strided_slice %40 {offsets = [1, 0], sizes = [1, 128], strides = [1, 1]} : vector<2x128xf32> to vector<1x128xf32>
    %cst_30 = arith.constant 9.99999974E-6 : f32
    %54 = vector.broadcast %cst_30 : f32 to vector<1x128xf32>
    %55 = arith.addf %51, %54 : vector<1x128xf32>
    %56 = math.rsqrt %55 : vector<1x128xf32>
    %57 = arith.mulf %52, %56 : vector<1x128xf32>
    %58 = arith.mulf %47, %57 : vector<1x128xf32>
    %59 = arith.subf %53, %58 : vector<1x128xf32>
    %60 = vector.broadcast %57 : vector<1x128xf32> to vector<8x128xf32>
    %61 = arith.mulf %38, %60 : vector<8x128xf32>
    %62 = vector.broadcast %59 : vector<1x128xf32> to vector<8x128xf32>
    %63 = arith.addf %61, %62 : vector<8x128xf32>
    %cst_31 = arith.constant 0.000000e+00 : f32
    %64 = vector.broadcast %cst_31 : f32 to vector<8x128xf32>
    %65 = arith.maximumf %63, %64 : vector<8x128xf32>
    %66 = arith.addf %65, %35 : vector<8x128xf32>
    %c2 = arith.constant 2 : index
    %c0_32 = arith.constant 0 : index
    %c0_33 = arith.constant 0 : index
    %67 = vector.load %arg1[%c2, %c0_32, %c0_33] : memref<4x128x128xf32, #tpu.memory_space<vmem>>, vector<1x128x128xf32>
    %68 = vector.shape_cast %67 : vector<1x128x128xf32> to vector<128x128xf32>
    %cst_34 = arith.constant dense<0.000000e+00> : vector<8x128xf32>
    %69 = tpu.matmul %66, %68, %cst_34 {dimension_numbers = #tpu.dot_dimension_numbers<[1], [0], [0], [1], [0, 0, 1, 1], [], []>} : vector<8x128xf32>, vector<128x128xf32>, vector<8x128xf32> -> vector<8x128xf32>
    %c2_35 = arith.constant 2 : index
    %c0_36 = arith.constant 0 : index
    %c0_37 = arith.constant 0 : index
    %70 = vector.load %arg2[%c2_35, %c0_36, %c0_37] : memref<4x2x128xf32, #tpu.memory_space<vmem>>, vector<1x2x128xf32>
    %71 = vector.shape_cast %70 : vector<1x2x128xf32> to vector<2x128xf32>
    %cst_38 = arith.constant dense<0.000000e+00> : vector<128xf32>
    %72 = vector.multi_reduction <add>, %69, %cst_38 [0] : vector<8x128xf32> to vector<128xf32>
    %73 = vector.shape_cast %72 : vector<128xf32> to vector<1x128xf32>
    %74 = arith.mulf %69, %69 : vector<8x128xf32>
    %cst_39 = arith.constant dense<0.000000e+00> : vector<128xf32>
    %75 = vector.multi_reduction <add>, %74, %cst_39 [0] : vector<8x128xf32> to vector<128xf32>
    %76 = vector.shape_cast %75 : vector<128xf32> to vector<1x128xf32>
    %cst_40 = arith.constant 1.250000e-01 : f32
    %77 = vector.broadcast %cst_40 : f32 to vector<1x128xf32>
    %78 = arith.mulf %73, %77 : vector<1x128xf32>
    %cst_41 = arith.constant 1.250000e-01 : f32
    %79 = vector.broadcast %cst_41 : f32 to vector<1x128xf32>
    %80 = arith.mulf %76, %79 : vector<1x128xf32>
    %81 = arith.mulf %78, %78 : vector<1x128xf32>
    %82 = arith.subf %80, %81 : vector<1x128xf32>
    %83 = vector.extract_strided_slice %71 {offsets = [0, 0], sizes = [1, 128], strides = [1, 1]} : vector<2x128xf32> to vector<1x128xf32>
    %84 = vector.extract_strided_slice %71 {offsets = [1, 0], sizes = [1, 128], strides = [1, 1]} : vector<2x128xf32> to vector<1x128xf32>
    %cst_42 = arith.constant 9.99999974E-6 : f32
    %85 = vector.broadcast %cst_42 : f32 to vector<1x128xf32>
    %86 = arith.addf %82, %85 : vector<1x128xf32>
    %87 = math.rsqrt %86 : vector<1x128xf32>
    %88 = arith.mulf %83, %87 : vector<1x128xf32>
    %89 = arith.mulf %78, %88 : vector<1x128xf32>
    %90 = arith.subf %84, %89 : vector<1x128xf32>
    %91 = vector.broadcast %88 : vector<1x128xf32> to vector<8x128xf32>
    %92 = arith.mulf %69, %91 : vector<8x128xf32>
    %93 = vector.broadcast %90 : vector<1x128xf32> to vector<8x128xf32>
    %94 = arith.addf %92, %93 : vector<8x128xf32>
    %cst_43 = arith.constant 0.000000e+00 : f32
    %95 = vector.broadcast %cst_43 : f32 to vector<8x128xf32>
    %96 = arith.maximumf %94, %95 : vector<8x128xf32>
    %c3 = arith.constant 3 : index
    %c0_44 = arith.constant 0 : index
    %c0_45 = arith.constant 0 : index
    %97 = vector.load %arg1[%c3, %c0_44, %c0_45] : memref<4x128x128xf32, #tpu.memory_space<vmem>>, vector<1x128x128xf32>
    %98 = vector.shape_cast %97 : vector<1x128x128xf32> to vector<128x128xf32>
    %cst_46 = arith.constant dense<0.000000e+00> : vector<8x128xf32>
    %99 = tpu.matmul %96, %98, %cst_46 {dimension_numbers = #tpu.dot_dimension_numbers<[1], [0], [0], [1], [0, 0, 1, 1], [], []>} : vector<8x128xf32>, vector<128x128xf32>, vector<8x128xf32> -> vector<8x128xf32>
    %c3_47 = arith.constant 3 : index
    %c0_48 = arith.constant 0 : index
    %c0_49 = arith.constant 0 : index
    %100 = vector.load %arg2[%c3_47, %c0_48, %c0_49] : memref<4x2x128xf32, #tpu.memory_space<vmem>>, vector<1x2x128xf32>
    %101 = vector.shape_cast %100 : vector<1x2x128xf32> to vector<2x128xf32>
    %102 = vector.extract_strided_slice %101 {offsets = [0, 0], sizes = [1, 128], strides = [1, 1]} : vector<2x128xf32> to vector<1x128xf32>
    %103 = vector.broadcast %102 : vector<1x128xf32> to vector<8x128xf32>
    %104 = arith.addf %99, %103 : vector<8x128xf32>
    %c0_50 = arith.constant 0 : index
    %c0_51 = arith.constant 0 : index
    %105 = vector.load %arg3[%c0_50, %c0_51] : memref<8x128xf32, #tpu.memory_space<vmem>>, vector<8x128xf32>
    tpu.vector_store %arg3[%c0_50, %c0_51], %104 {strides = array<i32>} : memref<8x128xf32, #tpu.memory_space<vmem>>, vector<8x128xf32>,
    return
  }
}

</mosaic_0001>

<bundles_post_ra>
// kernel: fwd.1
= control target key start
LH: loop header
LB: loop body
LE: loop exit
PB: predicated region body
PF: predicated region fallthrough
CT: control target
= control target key end

     0   :  { %8 = vsyncpa [#allocation4], 0  ;;  %s988_s0 = inlined_call_operand.hbm [shape: f32[8,32], index: 0, kind: input, shape index: {}]   ;;  %s989_s1 = inlined_call_operand.hbm [shape: f32[4,128,128], index: 1, kind: input, shape index: {}]   ;;  %s990_s2 = inlined_call_operand.hbm [shape: f32[4,2,128], index: 2, kind: input, shape index: {}]   ;;  %s991_s3 = inlined_call_operand.hbm [shape: f32[8,128], index: 3, kind: output, shape index: {}]  }
   0x1   :  { %9 = vsyncpa [#allocation7], 0 }
   0x2   :  { %10 = vsyncpa [#allocation5], 0  ;;  %s854_s12 = smov [#allocation6]  }
   0x3   :  { %s26_s13 = sshll.u32 %s854_s12, 4  ;;  %s27_s13 = int_to_ptr.vmem [resolvable:$true] %s26_s13 }
   0x4   :  { %s776_s14 = scalar_lea.vmem %s27_s13, 8192  ;;  %p781_p1 = scmp.lt.s32.totalorder %s27_s13, %s27_s13 }
   0x5   :  { %p777_p0 = scmp.ne.s32.totalorder %s27_s13, %s776_s14  ;;  %p782_p2 = scmp.lt.s32.totalorder %s776_s14, %s776_s14 }
   0x7   :  { %p783_p3 = por %p782_p2, %p781_p1 }
   0x9   :  { %p784_p4 = pnand %p783_p3, %p777_p0 }
   0xb   :  { %787 = shalt.err (!%p784_p4)
}
   0xc   :  { %s855_s15 = smov 128   ;;  %s856_s16 = smov 8  }
   0xd   :  { %32 = dma.hbm_to_vmem [thread:$0]  %s989_s1, 8192, %s27_s13, [#allocation7], %s855_s15, %s855_s15, %s856_s16  }
   0xe   :  { %s857_s19 = smov [#allocation3]   ;;  %s858_s21 = smov [#allocation8]  }
   0xf   :  { %s17_s20 = sshll.u32 %s857_s19, 4  ;;  %s38_s22 = sshll.u32 %s858_s21, 4  ;;  %s18_s20 = int_to_ptr.vmem [resolvable:$true] %s17_s20  ;;  %s39_s22 = int_to_ptr.vmem [resolvable:$true] %s38_s22 }
  0x10   :  { %s796_s23 = scalar_lea.vmem %s18_s20, 128  ;;  %p801_p6 = scmp.lt.s32.totalorder %s18_s20, %s18_s20 }
  0x11   :  { %p797_p5 = scmp.ne.s32.totalorder %s18_s20, %s796_s23  ;;  %p802_p7 = scmp.lt.s32.totalorder %s796_s23, %s796_s23 }
  0x13   :  { %p803_p8 = por %p802_p7, %p801_p6 }
  0x15   :  { %p804_p9 = pnand %p803_p8, %p797_p5 }
  0x17   :  { %807 = shalt.err (!%p804_p9)
}
  0x18   :  { %20 = dma.hbm_to_vmem [thread:$0]  %s988_s0, 128, %s18_s20, [#allocation4]  }
  0x19   :  { %s816_s26 = scalar_lea.vmem %s39_s22, 128  ;;  %p821_p11 = scmp.lt.s32.totalorder %s39_s22, %s39_s22 }
  0x1a   :  { %p817_p10 = scmp.ne.s32.totalorder %s39_s22, %s816_s26  ;;  %p822_p12 = scmp.lt.s32.totalorder %s816_s26, %s816_s26 }
  0x1c   :  { %p823_p13 = por %p822_p12, %p821_p11 }
  0x1e   :  { %p824_p0 = pnand %p823_p13, %p817_p10 }
  0x20   :  { %827 = shalt.err (!%p824_p0)
}
  0x21   :  { %s859_s1 = smov 32   ;;  %s860_s27 = smov 2  }
  0x22   :  { %44 = dma.hbm_to_vmem [thread:$0]  %s990_s2, 128, %s39_s22, [#allocation7], %s859_s1, %s859_s1, %s860_s27  }
  0x23   :  { %848 = dma.done.wait [#allocation4], 128  }
  0x24   :  { %849 = vsyncadd [#allocation4], 4294967168 }
  0x25   :  { %850 = dma.done.wait [#allocation7], 8320  }
  0x26   :  { %851 = vsyncadd [#allocation7], 4294958976  ;;  %v861_v0 = vmov 0.0   ;;  %vm862_vm0 = vmmov 0   ;;  %v74_v1 = vld [vmem:[#allocation6 + $0x78] sm:$0xff]  ;;  %v73_v2 = vld [vmem:[#allocation6 + $0x70] sm:$0xff]  ;;  %v171_v55 = vlaneseq }
  0x27   :  { %612 = vmatprep.subr.mxu0 %v861_v0  ;;  %54 = vst [vmem:[#allocation2] sm:$0xff] %v861_v0  ;;  %644 = vmatprep.mubr.msk.f32.mxu0 %vm862_vm0, %v861_v0  ;;  %v72_v3 = vld [vmem:[#allocation6 + $0x68] sm:$0xff]  ;;  %vm56_vm1 = vcmask 261120   ;;  %v71_v4 = vld [vmem:[#allocation6 + $0x60] sm:$0xff]  ;;  %v55_v5 = vld [vmem:[#allocation3] sm:$0xff]  ;;  %s863_s0 = smov [#allocation9]  }
  0x28   :  { %647 = vmatprep.subr.mxu1 %v861_v0  ;;  %679 = vmatprep.mubr.msk.f32.mxu1 %vm862_vm0, %v861_v0  ;;  %v70_v6 = vld [vmem:[#allocation6 + $0x58] sm:$0xff]  ;;  %57 = vst.msk [vmem:[#allocation2] sm:$0xff] %vm56_vm1, %v55_v5  ;;  %v69_v7 = vld [vmem:[#allocation6 + $0x50] sm:$0xff]  ;;  %v68_v8 = vld [vmem:[#allocation6 + $0x48] sm:$0xff]  ;;  %v172_v56 = vshrl.u32 %v171_v55, 7  ;;  %s534_s2 = sshll.u32 %s863_s0, 4  ;;  %s535_s2 = int_to_ptr.vmem [resolvable:$true] %s534_s2 }
  0x29   :  { %613 = vmatpush3.msra.mxu0 %v74_v1  ;;  %v67_v9 = vld [vmem:[#allocation6 + $0x40] sm:$0xff]  ;;  %v66_v10 = vld [vmem:[#allocation6 + $0x38] sm:$0xff]  ;;  %v65_v11 = vld [vmem:[#allocation6 + $0x30] sm:$0xff]  ;;  %s828_s30 = scalar_lea.vmem %s535_s2, 128  ;;  %p833_p2 = scmp.lt.s32.totalorder %s535_s2, %s535_s2 }
  0x2a   :  { %614 = vmatprep.subr.mxu0 %v861_v0  ;;  %v64_v12 = vld [vmem:[#allocation6 + $0x28] sm:$0xff]  ;;  %v63_v13 = vld [vmem:[#allocation6 + $0x20] sm:$0xff]  ;;  %v62_v14 = vld [vmem:[#allocation6 + $0x18] sm:$0xff]  ;;  %v937_v60 = vsub.s32 0, %v172_v56  ;;  %v940_v1 = vsub.s32 1, %v172_v56  ;;  %p829_p1 = scmp.ne.s32.totalorder %s535_s2, %s828_s30  ;;  %p834_p3 = scmp.lt.s32.totalorder %s828_s30, %s828_s30 }
  0x2b   :  { %615 = vmatpush3.msra.mxu0 %v73_v2  ;;  %v61_v15 = vld [vmem:[#allocation6 + $0x10] sm:$0xff]  ;;  %v60_v16 = vld [vmem:[#allocation6 + $0x8] sm:$0xff]  ;;  %v59_v17 = vld [vmem:[#allocation6] sm:$0xff] }
  0x2c   :  { %616 = vmatprep.subr.mxu0 %v861_v0  ;;  %v199_v19 = vld [vmem:[#allocation6 + $0xf8] sm:$0xff]  ;;  %v198_v20 = vld [vmem:[#allocation6 + $0xf0] sm:$0xff]  ;;  %v197_v21 = vld [vmem:[#allocation6 + $0xe8] sm:$0xff]  ;;  %p835_p4 = por %p834_p3, %p833_p2 }
  0x2d   :  { %617 = vmatpush3.msra.mxu0 %v72_v3  ;;  %648 = vmatpush3.msra.mxu1 %v199_v19  ;;  %v196_v22 = vld [vmem:[#allocation6 + $0xe0] sm:$0xff]  ;;  %v195_v23 = vld [vmem:[#allocation6 + $0xd8] sm:$0xff]  ;;  %v194_v24 = vld [vmem:[#allocation6 + $0xd0] sm:$0xff] }
  0x2e   :  { %618 = vmatprep.subr.mxu0 %v861_v0  ;;  %649 = vmatprep.subr.mxu1 %v861_v0  ;;  %v193_v25 = vld [vmem:[#allocation6 + $0xc8] sm:$0xff]  ;;  %v192_v26 = vld [vmem:[#allocation6 + $0xc0] sm:$0xff]  ;;  %v191_v27 = vld [vmem:[#allocation6 + $0xb8] sm:$0xff]  ;;  %p836_p5 = pnand %p835_p4, %p829_p1 }
  0x2f   :  { %619 = vmatpush3.msra.mxu0 %v71_v4  ;;  %v914_v18 = vld [vmem:[#allocation2] sm:$0xff]  ;;  %650 = vmatpush3.msra.mxu1 %v198_v20  ;;  %v189_v29 = vld [vmem:[#allocation6 + $0xa8] sm:$0xff]  ;;  %v188_v30 = vld [vmem:[#allocation6 + $0xa0] sm:$0xff] }
  0x30   :  { %620 = vmatprep.subr.mxu0 %v861_v0  ;;  %651 = vmatprep.subr.mxu1 %v861_v0  ;;  %v190_v28 = vld [vmem:[#allocation6 + $0xb0] sm:$0xff]  ;;  %v187_v31 = vld [vmem:[#allocation6 + $0x98] sm:$0xff]  ;;  %v185_v33 = vld [vmem:[#allocation6 + $0x88] sm:$0xff] }
  0x31   :  { %621 = vmatpush3.msra.mxu0 %v70_v6  ;;  %652 = vmatpush3.msra.mxu1 %v197_v21  ;;  %v186_v32 = vld [vmem:[#allocation6 + $0x90] sm:$0xff]  ;;  %v184_v34 = vld [vmem:[#allocation6 + $0x80] sm:$0xff]  ;;  %v313_v20 = vld [vmem:[#allocation6 + $0x118] sm:$0xff] }
  0x32   :  { %622 = vmatprep.subr.mxu0 %v861_v0  ;;  %653 = vmatprep.subr.mxu1 %v861_v0  ;;  %v145_v57 = vld [vmem:[#allocation8] sm:$0x3]  ;;  %v312_v21 = vld [vmem:[#allocation6 + $0x110] sm:$0xff]  ;;  %v450_v56 = vld [vmem:[#allocation6 + $0x1f8] sm:$0xff] }
  0x33   :  { %623 = vmatpush3.msra.mxu0 %v69_v7  ;;  %654 = vmatpush3.msra.mxu1 %v196_v22  ;;  %v314_v19 = vld [vmem:[#allocation6 + $0x120] sm:$0xff]  ;;  %v311_v22 = vld [vmem:[#allocation6 + $0x108] sm:$0xff] }
  0x34   :  { %624 = vmatprep.subr.mxu0 %v861_v0  ;;  %655 = vmatprep.subr.mxu1 %v861_v0 }
  0x35   :  { %625 = vmatpush3.msra.mxu0 %v68_v8  ;;  %656 = vmatpush3.msra.mxu1 %v195_v23  ;;  %v325_v8 = vld [vmem:[#allocation6 + $0x178] sm:$0xff]  ;;  %v310_v23 = vld [vmem:[#allocation6 + $0x100] sm:$0xff] }
  0x36   :  { %626 = vmatprep.subr.mxu0 %v861_v0  ;;  %657 = vmatprep.subr.mxu1 %v861_v0 }
  0x37   :  { %627 = vmatpush3.msra.mxu0 %v67_v9  ;;  %658 = vmatpush3.msra.mxu1 %v194_v24  ;;  %v324_v9 = vld [vmem:[#allocation6 + $0x170] sm:$0xff] }
  0x38   :  { %628 = vmatprep.subr.mxu0 %v861_v0  ;;  %659 = vmatprep.subr.mxu1 %v861_v0 }
  0x39   :  { %629 = vmatpush3.msra.mxu0 %v66_v10  ;;  %660 = vmatpush3.msra.mxu1 %v193_v25  ;;  %v323_v10 = vld [vmem:[#allocation6 + $0x168] sm:$0xff] }
  0x3a   :  { %630 = vmatprep.subr.mxu0 %v861_v0  ;;  %661 = vmatprep.subr.mxu1 %v861_v0 }
  0x3b   :  { %631 = vmatpush3.msra.mxu0 %v65_v11  ;;  %662 = vmatpush3.msra.mxu1 %v192_v26  ;;  %v322_v11 = vld [vmem:[#allocation6 + $0x160] sm:$0xff] }
  0x3c   :  { %632 = vmatprep.subr.mxu0 %v861_v0  ;;  %663 = vmatprep.subr.mxu1 %v861_v0 }
  0x3d   :  { %633 = vmatpush3.msra.mxu0 %v64_v12  ;;  %664 = vmatpush3.msra.mxu1 %v191_v27  ;;  %v321_v12 = vld [vmem:[#allocation6 + $0x158] sm:$0xff] }
  0x3e   :  { %634 = vmatprep.subr.mxu0 %v861_v0  ;;  %665 = vmatprep.subr.mxu1 %v861_v0 }
  0x3f   :  { %635 = vmatpush3.msra.mxu0 %v63_v13  ;;  %666 = vmatpush3.msra.mxu1 %v190_v28  ;;  %v320_v13 = vld [vmem:[#allocation6 + $0x150] sm:$0xff] }
  0x40   :  { %636 = vmatprep.subr.mxu0 %v861_v0  ;;  %667 = vmatprep.subr.mxu1 %v861_v0 }
  0x41   :  { %637 = vmatpush3.msra.mxu0 %v62_v14  ;;  %668 = vmatpush3.msra.mxu1 %v189_v29  ;;  %v319_v14 = vld [vmem:[#allocation6 + $0x148] sm:$0xff] }
  0x42   :  { %638 = vmatprep.subr.mxu0 %v861_v0  ;;  %669 = vmatprep.subr.mxu1 %v861_v0 }
  0x43   :  { %639 = vmatpush3.msra.mxu0 %v61_v15  ;;  %670 = vmatpush3.msra.mxu1 %v188_v30  ;;  %v318_v15 = vld [vmem:[#allocation6 + $0x140] sm:$0xff] }
  0x44   :  { %640 = vmatprep.subr.mxu0 %v861_v0  ;;  %671 = vmatprep.subr.mxu1 %v861_v0 }
  0x45   :  { %641 = vmatpush3.msra.mxu0 %v60_v16  ;;  %672 = vmatpush3.msra.mxu1 %v187_v31  ;;  %v317_v16 = vld [vmem:[#allocation6 + $0x138] sm:$0xff] }
  0x46   :  { %642 = vmatprep.subr.mxu0 %v861_v0  ;;  %673 = vmatprep.subr.mxu1 %v861_v0 }
  0x47   :  { %643 = vmatpush3.msra.mxu0 %v59_v17  ;;  %674 = vmatpush3.msra.mxu1 %v186_v32  ;;  %v316_v17 = vld [vmem:[#allocation6 + $0x130] sm:$0xff] }
  0x48   :  { %645 = vmatmul.mubr.f32.vlgmr.msra.gmra.mxu0 %v914_v18  ;;  %682 = vmatprep.subr.mxu0 %v861_v0 }
  0x49   :  { %714 = vmatprep.mubr.msk.f32.mxu0 %vm862_vm0, %v861_v0  ;;  %675 = vmatprep.subr.mxu1 %v861_v0 }
  0x4a   :  { %676 = vmatpush3.msra.mxu1 %v185_v33  ;;  %683 = vmatpush3.msra.mxu0 %v325_v8  ;;  %v437_v8 = vld [vmem:[#allocation6 + $0x190] sm:$0xff] }
  0x4b   :  { %677 = vmatprep.subr.mxu1 %v861_v0  ;;  %684 = vmatprep.subr.mxu0 %v861_v0 }
  0x4c   :  { %678 = vmatpush3.msra.mxu1 %v184_v34  ;;  %685 = vmatpush3.msra.mxu0 %v324_v9  ;;  %v436_v9 = vld [vmem:[#allocation6 + $0x188] sm:$0xff] }
  0x4d   :  { %717 = vmatprep.subr.mxu1 %v861_v0  ;;  %686 = vmatprep.subr.mxu0 %v861_v0 }
  0x4e   :  { %687 = vmatpush3.msra.mxu0 %v323_v10  ;;  %v435_v10 = vld [vmem:[#allocation6 + $0x180] sm:$0xff] }
  0x4f   :  { %688 = vmatprep.subr.mxu0 %v861_v0 }
  0x50   :  { %689 = vmatpush3.msra.mxu0 %v322_v11 }
  0x51   :  { %690 = vmatprep.subr.mxu0 %v861_v0 }
  0x52   :  { %691 = vmatpush3.msra.mxu0 %v321_v12 }
  0x53   :  { %692 = vmatprep.subr.mxu0 %v861_v0 }
  0x54   :  { %693 = vmatpush3.msra.mxu0 %v320_v13 }
  0x55   :  { %694 = vmatprep.subr.mxu0 %v861_v0 }
  0x56   :  { %695 = vmatpush3.msra.mxu0 %v319_v14 }
  0x57   :  { %696 = vmatprep.subr.mxu0 %v861_v0 }
  0x58   :  { %697 = vmatpush3.msra.mxu0 %v318_v15 }
  0x59   :  { %698 = vmatprep.subr.mxu0 %v861_v0 }
  0x5a   :  { %699 = vmatpush3.msra.mxu0 %v317_v16 }
  0x5b   :  { %700 = vmatprep.subr.mxu0 %v861_v0 }
  0x5c   :  { %701 = vmatpush3.msra.mxu0 %v316_v17 }
  0x5d   :  { %702 = vmatprep.subr.mxu0 %v861_v0 }
 0x108   :  { %v141_v35 = vpop.f32.mrf.mxu0 }
 0x109   :  { %v146_v36 = vrot.slane %v141_v35, 4  ;;  %v152_v37 = vmul.f32 %v141_v35, %v141_v35 }
 0x10a   :  { %v646_v38 = vpop.f32.mrf.mxu0 }
 0x10b   :  { %v147_v39 = vadd.f32 %v146_v36, %v141_v35  ;;  %v153_v40 = vrot.slane %v152_v37, 4 }
 0x10d   :  { %v148_v41 = vrot.slane %v147_v39, 2  ;;  %v154_v42 = vadd.f32 %v153_v40, %v152_v37 }
 0x10f   :  { %v149_v43 = vadd.f32 %v148_v41, %v147_v39  ;;  %v155_v44 = vrot.slane %v154_v42, 2 }
 0x111   :  { %v150_v45 = vrot.slane %v149_v43, 1  ;;  %v156_v46 = vadd.f32 %v155_v44, %v154_v42  ;;  %v271_v44 = vld [vmem:[#allocation8 + $0x2] sm:$0x3] }
 0x113   :  { %v151_v47 = vadd.f32 %v150_v45, %v149_v43  ;;  %v157_v48 = vrot.slane %v156_v46, 1 }
 0x115   :  { %v158_v49 = vadd.f32 %v157_v48, %v156_v46  ;;  %v159_v50 = vmul.f32 0.125, %v151_v47 }
 0x117   :  { %v160_v51 = vmul.f32 0.125, %v158_v49  ;;  %v161_v52 = vmul.f32 %v159_v50, %v159_v50 }
 0x119   :  { %v162_v53 = vsub.f32 %v160_v51, %v161_v52 }
 0x11b   :  { %v163_v54 = vadd.f32 1e-05, %v162_v53 }
 0x11d   :  { %762 = vrsqrt.f32 %v163_v54 }
 0x12a   :  { %v763_v58 = vpop.eup %762 }
 0x12b   :  { %v165_v59 = vmul.f32 %v763_v58, %v145_v57  ;;  %v448_v58 = vld [vmem:[#allocation6 + $0x1e8] sm:$0xff] }
 0x12d   :  { %v166_v61 = vmul.f32 %v165_v59, %v159_v50  ;;  %v174_v63 = vrot.slane %v165_v59, %v937_v60  ;;  %v447_v59 = vld [vmem:[#allocation6 + $0x1e0] sm:$0xff] }
 0x12f   :  { %v168_v62 = vrot.slane %v166_v61, 7  ;;  %v175_v3 = vmul.f32 %v174_v63, %v141_v35  ;;  %v446_v61 = vld [vmem:[#allocation6 + $0x1d8] sm:$0xff]  ;;  %v444_v63 = vld [vmem:[#allocation6 + $0x1c8] sm:$0xff] }
 0x131   :  { %v170_v2 = vsub.f32 %v145_v57, %v168_v62  ;;  %v449_v57 = vld [vmem:[#allocation6 + $0x1f0] sm:$0xff] }
 0x132   :  { %v445_v62 = vld [vmem:[#allocation6 + $0x1d0] sm:$0xff] }
 0x133   :  { %v179_v4 = vrot.slane %v170_v2, %v940_v1  ;;  %v443_v2 = vld [vmem:[#allocation6 + $0x1c0] sm:$0xff] }
 0x135   :  { %v180_v5 = vadd.f32 %v179_v4, %v175_v3  ;;  %v442_v3 = vld [vmem:[#allocation6 + $0x1b8] sm:$0xff]  ;;  %v441_v4 = vld [vmem:[#allocation6 + $0x1b0] sm:$0xff] }
 0x137   :  { %v181_v6 = vmax.f32 %v180_v5, 0.0  ;;  %v440_v5 = vld [vmem:[#allocation6 + $0x1a8] sm:$0xff] }
 0x139   :  { %v944_v7 = vadd.f32 %v181_v6, %v914_v18  ;;  %v315_v18 = vld [vmem:[#allocation6 + $0x128] sm:$0xff]  ;;  %v439_v6 = vld [vmem:[#allocation6 + $0x1a0] sm:$0xff] }
 0x13a   :  { %703 = vmatpush3.msra.mxu0 %v315_v18 }
 0x13b   :  { %680 = vmatmul.mubr.f32.vlgmr.msra.gmra.mxu1 %v944_v7  ;;  %704 = vmatprep.subr.mxu0 %v861_v0 }
 0x13c   :  { %749 = vmatprep.mubr.msk.f32.mxu1 %vm862_vm0, %v861_v0  ;;  %705 = vmatpush3.msra.mxu0 %v314_v19 }
 0x13d   :  { %706 = vmatprep.subr.mxu0 %v861_v0  ;;  %718 = vmatpush3.msra.mxu1 %v450_v56 }
 0x13e   :  { %707 = vmatpush3.msra.mxu0 %v313_v20  ;;  %719 = vmatprep.subr.mxu1 %v861_v0 }
 0x13f   :  { %708 = vmatprep.subr.mxu0 %v861_v0  ;;  %720 = vmatpush3.msra.mxu1 %v449_v57 }
 0x140   :  { %709 = vmatpush3.msra.mxu0 %v312_v21  ;;  %721 = vmatprep.subr.mxu1 %v861_v0 }
 0x141   :  { %710 = vmatprep.subr.mxu0 %v861_v0  ;;  %722 = vmatpush3.msra.mxu1 %v448_v58 }
 0x142   :  { %711 = vmatpush3.msra.mxu0 %v311_v22  ;;  %723 = vmatprep.subr.mxu1 %v861_v0 }
 0x143   :  { %712 = vmatprep.subr.mxu0 %v861_v0  ;;  %724 = vmatpush3.msra.mxu1 %v447_v59 }
 0x144   :  { %713 = vmatpush3.msra.mxu0 %v310_v23  ;;  %725 = vmatprep.subr.mxu1 %v861_v0 }
 0x145   :  { %726 = vmatpush3.msra.mxu1 %v446_v61 }
 0x146   :  { %727 = vmatprep.subr.mxu1 %v861_v0 }
 0x147   :  { %728 = vmatpush3.msra.mxu1 %v445_v62 }
 0x148   :  { %729 = vmatprep.subr.mxu1 %v861_v0 }
 0x149   :  { %730 = vmatpush3.msra.mxu1 %v444_v63 }
 0x14a   :  { %731 = vmatprep.subr.mxu1 %v861_v0 }
 0x14b   :  { %732 = vmatpush3.msra.mxu1 %v443_v2 }
 0x14c   :  { %733 = vmatprep.subr.mxu1 %v861_v0 }
 0x14d   :  { %734 = vmatpush3.msra.mxu1 %v442_v3 }
 0x14e   :  { %735 = vmatprep.subr.mxu1 %v861_v0 }
 0x14f   :  { %736 = vmatpush3.msra.mxu1 %v441_v4 }
 0x150   :  { %737 = vmatprep.subr.mxu1 %v861_v0 }
 0x151   :  { %738 = vmatpush3.msra.mxu1 %v440_v5 }
 0x152   :  { %739 = vmatprep.subr.mxu1 %v861_v0 }
 0x153   :  { %740 = vmatpush3.msra.mxu1 %v439_v6 }
 0x154   :  { %741 = vmatprep.subr.mxu1 %v861_v0 }
 0x1fb   :  { %v266_v24 = vpop.f32.mrf.mxu1 }
 0x1fc   :  { %v272_v25 = vrot.slane %v266_v24, 4  ;;  %v278_v26 = vmul.f32 %v266_v24, %v266_v24 }
 0x1fd   :  { %v681_v27 = vpop.f32.mrf.mxu1 }
 0x1fe   :  { %v273_v28 = vadd.f32 %v272_v25, %v266_v24  ;;  %v279_v29 = vrot.slane %v278_v26, 4 }
 0x200   :  { %v274_v30 = vrot.slane %v273_v28, 2  ;;  %v280_v31 = vadd.f32 %v279_v29, %v278_v26 }
 0x202   :  { %v275_v32 = vadd.f32 %v274_v30, %v273_v28  ;;  %v281_v33 = vrot.slane %v280_v31, 2  ;;  %v397_v30 = vld [vmem:[#allocation8 + $0x4] sm:$0x3] }
 0x204   :  { %v276_v34 = vrot.slane %v275_v32, 1  ;;  %v282_v35 = vadd.f32 %v281_v33, %v280_v31 }
 0x206   :  { %v277_v36 = vadd.f32 %v276_v34, %v275_v32  ;;  %v283_v37 = vrot.slane %v282_v35, 1 }
 0x208   :  { %v284_v38 = vadd.f32 %v283_v37, %v282_v35  ;;  %v285_v39 = vmul.f32 0.125, %v277_v36 }
 0x20a   :  { %v286_v40 = vmul.f32 0.125, %v284_v38  ;;  %v287_v41 = vmul.f32 %v285_v39, %v285_v39 }
 0x20c   :  { %v288_v42 = vsub.f32 %v286_v40, %v287_v41  ;;  %v452_v41 = vld [vmem:[#allocation8 + $0x6] sm:$0x3] }
 0x20e   :  { %v289_v43 = vadd.f32 1e-05, %v288_v42  ;;  %v456_v42 = vrot.slane %v452_v41, %v937_v60 }
 0x210   :  { %764 = vrsqrt.f32 %v289_v43 }
 0x21d   :  { %v765_v45 = vpop.eup %764 }
 0x21e   :  { %v291_v46 = vmul.f32 %v765_v45, %v271_v44 }
 0x220   :  { %v292_v47 = vmul.f32 %v291_v46, %v285_v39  ;;  %v300_v49 = vrot.slane %v291_v46, %v937_v60 }
 0x222   :  { %v294_v48 = vrot.slane %v292_v47, 7  ;;  %v301_v51 = vmul.f32 %v300_v49, %v266_v24 }
 0x224   :  { %v296_v50 = vsub.f32 %v271_v44, %v294_v48 }
 0x226   :  { %v305_v52 = vrot.slane %v296_v50, %v940_v1 }
 0x228   :  { %v306_v53 = vadd.f32 %v305_v52, %v301_v51 }
 0x22a   :  { %v307_v54 = vmax.f32 %v306_v53, 0.0 }
 0x22c   :  { %v308_v55 = vadd.f32 %v307_v54, %v944_v7  ;;  %v438_v7 = vld [vmem:[#allocation6 + $0x198] sm:$0xff] }
 0x22d   :  { %742 = vmatpush3.msra.mxu1 %v438_v7 }
 0x22e   :  { %715 = vmatmul.mubr.f32.vlgmr.msra.gmra.mxu0 %v308_v55  ;;  %743 = vmatprep.subr.mxu1 %v861_v0 }
 0x22f   :  { %744 = vmatpush3.msra.mxu1 %v437_v8 }
 0x230   :  { %745 = vmatprep.subr.mxu1 %v861_v0 }
 0x231   :  { %746 = vmatpush3.msra.mxu1 %v436_v9 }
 0x232   :  { %747 = vmatprep.subr.mxu1 %v861_v0 }
 0x233   :  { %748 = vmatpush3.msra.mxu1 %v435_v10 }
 0x2ee   :  { %v392_v11 = vpop.f32.mrf.mxu0 }
 0x2ef   :  { %v398_v12 = vrot.slane %v392_v11, 4  ;;  %v404_v13 = vmul.f32 %v392_v11, %v392_v11 }
 0x2f0   :  { %v716_v14 = vpop.f32.mrf.mxu0 }
 0x2f1   :  { %v399_v15 = vadd.f32 %v398_v12, %v392_v11  ;;  %v405_v16 = vrot.slane %v404_v13, 4 }
 0x2f3   :  { %v400_v17 = vrot.slane %v399_v15, 2  ;;  %v406_v18 = vadd.f32 %v405_v16, %v404_v13 }
 0x2f5   :  { %v401_v19 = vadd.f32 %v400_v17, %v399_v15  ;;  %v407_v20 = vrot.slane %v406_v18, 2 }
 0x2f7   :  { %v402_v21 = vrot.slane %v401_v19, 1  ;;  %v408_v22 = vadd.f32 %v407_v20, %v406_v18 }
 0x2f9   :  { %v403_v23 = vadd.f32 %v402_v21, %v401_v19  ;;  %v409_v24 = vrot.slane %v408_v22, 1 }
 0x2fb   :  { %v410_v25 = vadd.f32 %v409_v24, %v408_v22  ;;  %v411_v26 = vmul.f32 0.125, %v403_v23 }
 0x2fd   :  { %v412_v27 = vmul.f32 0.125, %v410_v25  ;;  %v413_v28 = vmul.f32 %v411_v26, %v411_v26 }
 0x2ff   :  { %v414_v0 = vsub.f32 %v412_v27, %v413_v28 }
 0x301   :  { %v415_v29 = vadd.f32 1e-05, %v414_v0 }
 0x303   :  { %766 = vrsqrt.f32 %v415_v29 }
 0x310   :  { %v767_v31 = vpop.eup %766 }
 0x311   :  { %v417_v32 = vmul.f32 %v767_v31, %v397_v30 }
 0x313   :  { %v418_v33 = vmul.f32 %v417_v32, %v411_v26  ;;  %v426_v35 = vrot.slane %v417_v32, %v937_v60 }
 0x315   :  { %v420_v34 = vrot.slane %v418_v33, 7  ;;  %v427_v37 = vmul.f32 %v426_v35, %v392_v11 }
 0x317   :  { %v422_v36 = vsub.f32 %v397_v30, %v420_v34 }
 0x319   :  { %v431_v38 = vrot.slane %v422_v36, %v940_v1 }
 0x31b   :  { %v432_v39 = vadd.f32 %v431_v38, %v427_v37 }
 0x31d   :  { %v433_v40 = vmax.f32 %v432_v39, 0.0 }
 0x31f   :  { %750 = vmatmul.mubr.f32.vlgmr.msra.gmra.mxu1 %v433_v40 }
 0x3df   :  { %v523_v43 = vpop.f32.mrf.mxu1 }
 0x3e0   :  { %v524_v44 = vadd.f32 %v523_v43, %v456_v42 }
 0x3e1   :  { %v751_v45 = vpop.f32.mrf.mxu1 }
 0x3e2   :  { %527 = vst [vmem:[#allocation9] sm:$0xff] %v524_v44 }
 0x3e3   :  { %839 = shalt.err (!%p836_p5)
}
 0x3e4   :  { %537 = dma.vmem_to_hbm [thread:$0]  %s535_s2, 128, %s991_s3, [#allocation5]  }
 0x3e5   :  { %852 = dma.done.wait [#allocation5], 128  }
 0x3e6   :  { %853 = vsyncadd [#allocation5], 4294967168 }
 0x3e7   :  { %541 = vsyncpa [#allocation4], 1 }
 0x3e8   :  { %542 = vsyncpa [#allocation7], 1 }
 0x3e9   :  { %543 = vsyncpa [#allocation5], 1 }

</bundles_post_ra>
